<compile_context>
chip_gen: v5e
topology: v5e:2x2
jax: 0.10.0
libtpu: 0.0.40
codegen_flags: <defaults>
</compile_context>

<pallas_src>
import jax
import jax.numpy as jnp
import numpy as np
from jax.experimental import pallas as pl
from jax.experimental.pallas import tpu as pltpu


def _gfe_kernel(x_ref, cw_ref, lkt_ref, bias_ref, o_ref):
    # x_ref:    (1, C_in, H*W)     one batch element, lane-dense input
    # cw_ref:   (C_out, C_in)      BN-folded 1x1-conv weight
    # lkt_ref:  (H*W, Hout*W)      kron(lin_w, I_W)^T  (Linear over H, identity over W)
    # bias_ref: (C_out, Hout*W)    fully folded bias (conv bias through Linear + lin bias)
    # o_ref:    (1, C_out, Hout*W) lane-dense output block
    x = x_ref[0].astype(jnp.float32)                                     # (C_in, H*W)
    z = jnp.dot(cw_ref[...], x, preferred_element_type=jnp.float32)      # (C_out, H*W)
    out = jnp.dot(z, lkt_ref[...], preferred_element_type=jnp.float32)   # (C_out, Hout*W)
    out = out + bias_ref[...]                                            # lane-aligned VPU add
    o_ref[0] = jax.nn.sigmoid(out).astype(o_ref.dtype)


def global_fea_embed_forward(x, params, *, eps=1e-5):
    """x: (N, C_in, H, W) NCHW. Returns (N, C_out, Hout, W)."""
    N, C_in, H, W = x.shape
    gamma = params["bn_gamma"].astype(jnp.float32)
    beta = params["bn_beta"].astype(jnp.float32)
    conv_w = params["conv_w"].reshape(params["conv_w"].shape[0], C_in).astype(jnp.float32)
    conv_b = params["conv_b"].astype(jnp.float32)
    lin_w = params["lin_w"].astype(jnp.float32)          # (Hout, H)
    lin_b = params["lin_b"].astype(jnp.float32)          # (Hout,)
    C_out = conv_w.shape[0]
    Hout = lin_w.shape[0]

    # BatchNorm2d training-mode batch statistics (f32 accumulation), folded
    # into the conv weight/bias.
    # TODO(synk): running_mean/running_var momentum buffer updates (training
    # bookkeeping, not part of the returned value) are not reproduced.
    x32 = x.astype(jnp.float32)
    mean = jnp.mean(x32, axis=(0, 2, 3))
    var = jnp.var(x32, axis=(0, 2, 3))
    scale = gamma * jax.lax.rsqrt(var + eps)             # (C_in,)
    shift = beta - mean * scale                          # (C_in,)
    cw_eff = conv_w * scale[None, :]                     # (C_out, C_in)
    cb_eff = conv_b + conv_w @ shift                     # (C_out,)

    # Fold conv bias through the Linear, plus the Linear bias, into one
    # lane-aligned (C_out, Hout*W) bias block.
    bias_full = cb_eff[:, None] * jnp.sum(lin_w, axis=1)[None, :] + lin_b[None, :]
    bias2 = jnp.broadcast_to(bias_full[:, :, None], (C_out, Hout, W)).reshape(C_out, Hout * W)

    # Linear over H expressed on the fused (H*W) lane axis: kron(lin_w, I_W)^T.
    lkt = jnp.kron(lin_w.T, jnp.eye(W, dtype=jnp.float32))   # (H*W, Hout*W)

    # Free reshapes only (no host transposes): stay in native NCHW memory order.
    x2 = x.reshape(N, C_in, H * W)

    flops = 2 * N * (C_out * C_in * H * W + C_out * (H * W) * (Hout * W))
    bytes_accessed = 4 * (x2.size + cw_eff.size + lkt.size + bias2.size
                          + N * C_out * Hout * W)
    cost = pl.CostEstimate(flops=flops,
                           transcendentals=N * C_out * Hout * W,
                           bytes_accessed=bytes_accessed)

    out2 = pl.pallas_call(
        _gfe_kernel,
        out_shape=jax.ShapeDtypeStruct((N, C_out, Hout * W), x.dtype),
        grid_spec=pltpu.PrefetchScalarGridSpec(
            num_scalar_prefetch=0,
            grid=(N,),
            in_specs=[
                pl.BlockSpec((1, C_in, H * W), lambda n: (n, 0, 0)),
                pl.BlockSpec((C_out, C_in), lambda n: (0, 0)),
                pl.BlockSpec((H * W, Hout * W), lambda n: (0, 0)),
                pl.BlockSpec((C_out, Hout * W), lambda n: (0, 0)),
            ],
            out_specs=pl.BlockSpec((1, C_out, Hout * W), lambda n: (n, 0, 0)),
        ),
        compiler_params=pltpu.CompilerParams(
            dimension_semantics=("parallel",)),
        cost_estimate=cost,
    )(x2, cw_eff, lkt, bias2)

    # Free reshape back to the PyTorch output layout (N, C_out, Hout, W).
    return out2.reshape(N, C_out, Hout, W)


def _reference(x, params, *, eps=1e-5):
    """Pure-JAX reference mirroring the PyTorch forward."""
    C_in = x.shape[1]
    C_out = params["conv_w"].shape[0]
    mean = jnp.mean(x, axis=(0, 2, 3), keepdims=True)
    var = jnp.var(x, axis=(0, 2, 3), keepdims=True)
    g = params["bn_gamma"].reshape(1, C_in, 1, 1)
    b = params["bn_beta"].reshape(1, C_in, 1, 1)
    xbn = (x - mean) / jnp.sqrt(var + eps) * g + b
    z = jnp.einsum('oc,nchw->nohw', params["conv_w"].reshape(C_out, C_in), xbn)
    z = z + params["conv_b"].reshape(1, C_out, 1, 1)
    zc = jnp.transpose(z, (0, 1, 3, 2))                       # (N, C_out, W, H)
    out = jnp.einsum('ncwh,ph->ncwp', zc, params["lin_w"]) + params["lin_b"]
    out = jnp.transpose(out, (0, 1, 3, 2))                    # (N, C_out, Hout, W)
    return jax.nn.sigmoid(out)


if __name__ == "__main__":
    # Small shapes consistent with the module:
    #   input_channel=4, out_channel=8, in_feas_len=H=16, out_feas_len=8
    N, C_in, H, W = 2, 4, 16, 16
    C_out, Hout = 8, 8

    key = jax.random.PRNGKey(0)
    kx, kg, kb, kcw, kcb, klw, klb = jax.random.split(key, 7)

    x = jax.random.normal(kx, (N, C_in, H, W), dtype=jnp.float32)
    params = {
        "bn_gamma": jax.random.uniform(kg, (C_in,), jnp.float32, 0.5, 1.5),
        "bn_beta": 0.1 * jax.random.normal(kb, (C_in,), jnp.float32),
        "conv_w": 0.2 * jax.random.normal(kcw, (C_out, C_in, 1, 1), jnp.float32),
        "conv_b": 0.1 * jax.random.normal(kcb, (C_out,), jnp.float32),
        "lin_w": 0.2 * jax.random.normal(klw, (Hout, H), jnp.float32),
        "lin_b": 0.1 * jax.random.normal(klb, (Hout,), jnp.float32),
    }

    out = jax.block_until_ready(global_fea_embed_forward(x, params))
    ref = jax.block_until_ready(_reference(x, params))

    assert out.shape == (N, C_out, Hout, W), out.shape
    np.testing.assert_allclose(np.asarray(out), np.asarray(ref),
                               rtol=1e-5, atol=1e-5)
    print("KERNEL_OK")
</pallas_src>

<mosaic_0001>
module attributes {stable_mosaic.version = 11 : i64} {
  func.func @_gfe_kernel(%arg0: i32, %arg1: memref<1x4x256xf32, #tpu.memory_space<vmem>>, %arg2: memref<8x4xf32, #tpu.memory_space<vmem>>, %arg3: memref<256x128xf32, #tpu.memory_space<vmem>>, %arg4: memref<8x128xf32, #tpu.memory_space<vmem>>, %arg5: memref<1x8x128xf32, #tpu.memory_space<vmem>>) attributes {dimension_semantics = [#tpu.dimension_semantics<parallel>], iteration_bounds = array<i64: 2>, scalar_prefetch = 0 : i64, scratch_operands = 0 : i64, tpu.core_type = #tpu.core_type<tc>, window_params = [{transform_indices = @transform_0, window_bounds = array<i64: 1, 4, 256>}, {pipeline_mode = #tpu.pipeline_mode<synchronous>, transform_indices = @transform_1, window_bounds = array<i64: 8, 4>}, {pipeline_mode = #tpu.pipeline_mode<synchronous>, transform_indices = @transform_2, window_bounds = array<i64: 256, 128>}, {pipeline_mode = #tpu.pipeline_mode<synchronous>, transform_indices = @transform_3, window_bounds = array<i64: 8, 128>}, {transform_indices = @transform_4, window_bounds = array<i64: 1, 8, 128>}]} {
    %c0 = arith.constant 0 : index
    %c0_0 = arith.constant 0 : index
    %c0_1 = arith.constant 0 : index
    %0 = vector.load %arg1[%c0, %c0_0, %c0_1] : memref<1x4x256xf32, #tpu.memory_space<vmem>>, vector<1x4x256xf32>
    %1 = vector.shape_cast %0 : vector<1x4x256xf32> to vector<4x256xf32>
    %c0_2 = arith.constant 0 : index
    %c0_3 = arith.constant 0 : index
    %2 = vector.load %arg2[%c0_2, %c0_3] : memref<8x4xf32, #tpu.memory_space<vmem>>, vector<8x4xf32>
    %cst = arith.constant dense<0.000000e+00> : vector<8x256xf32>
    %3 = tpu.matmul %2, %1, %cst {dimension_numbers = #tpu.dot_dimension_numbers<[1], [0], [0], [1], [0, 0, 1, 1], [], []>} : vector<8x4xf32>, vector<4x256xf32>, vector<8x256xf32> -> vector<8x256xf32>
    %c0_4 = arith.constant 0 : index
    %c0_5 = arith.constant 0 : index
    %4 = vector.load %arg3[%c0_4, %c0_5] : memref<256x128xf32, #tpu.memory_space<vmem>>, vector<256x128xf32>
    %cst_6 = arith.constant dense<0.000000e+00> : vector<8x128xf32>
    %5 = tpu.matmul %3, %4, %cst_6 {dimension_numbers = #tpu.dot_dimension_numbers<[1], [0], [0], [1], [0, 0, 1, 1], [], []>} : vector<8x256xf32>, vector<256x128xf32>, vector<8x128xf32> -> vector<8x128xf32>
    %c0_7 = arith.constant 0 : index
    %c0_8 = arith.constant 0 : index
    %6 = vector.load %arg4[%c0_7, %c0_8] : memref<8x128xf32, #tpu.memory_space<vmem>>, vector<8x128xf32>
    %7 = arith.addf %5, %6 : vector<8x128xf32>
    %8 = arith.negf %7 : vector<8x128xf32>
    %9 = math.exp %8 : vector<8x128xf32>
    %cst_9 = arith.constant 1.000000e+00 : f32
    %10 = vector.broadcast %cst_9 : f32 to vector<8x128xf32>
    %11 = arith.addf %10, %9 : vector<8x128xf32>
    %12 = arith.divf %10, %11 : vector<8x128xf32>
    %c0_10 = arith.constant 0 : index
    %c0_11 = arith.constant 0 : index
    %c0_12 = arith.constant 0 : index
    %13 = vector.load %arg5[%c0_10, %c0_11, %c0_12] : memref<1x8x128xf32, #tpu.memory_space<vmem>>, vector<1x8x128xf32>
    %14 = vector.shape_cast %13 : vector<1x8x128xf32> to vector<8x128xf32>
    %15 = vector.shape_cast %12 : vector<8x128xf32> to vector<1x8x128xf32>
    tpu.vector_store %arg5[%c0_10, %c0_11, %c0_12], %15 {strides = array<i32>} : memref<1x8x128xf32, #tpu.memory_space<vmem>>, vector<1x8x128xf32>,
    return
  }
  func.func @transform_0(%arg0: i32) -> (i32, i32, i32) {
    %c0_i32 = arith.constant 0 : i32
    %c0_i32_0 = arith.constant 0 : i32
    %c0_i32_1 = arith.constant 0 : i32
    return %arg0, %c0_i32, %c0_i32_0 : i32, i32, i32
  }
  func.func @transform_1(%arg0: i32) -> (i32, i32) {
    %c0_i32 = arith.constant 0 : i32
    %c0_i32_0 = arith.constant 0 : i32
    %c0_i32_1 = arith.constant 0 : i32
    return %c0_i32, %c0_i32_0 : i32, i32
  }
  func.func @transform_2(%arg0: i32) -> (i32, i32) {
    %c0_i32 = arith.constant 0 : i32
    %c0_i32_0 = arith.constant 0 : i32
    %c0_i32_1 = arith.constant 0 : i32
    return %c0_i32, %c0_i32_0 : i32, i32
  }
  func.func @transform_3(%arg0: i32) -> (i32, i32) {
    %c0_i32 = arith.constant 0 : i32
    %c0_i32_0 = arith.constant 0 : i32
    %c0_i32_1 = arith.constant 0 : i32
    return %c0_i32, %c0_i32_0 : i32, i32
  }
  func.func @transform_4(%arg0: i32) -> (i32, i32, i32) {
    %c0_i32 = arith.constant 0 : i32
    %c0_i32_0 = arith.constant 0 : i32
    %c0_i32_1 = arith.constant 0 : i32
    return %arg0, %c0_i32, %c0_i32_0 : i32, i32, i32
  }
}

</mosaic_0001>

<bundles_post_ra>
// kernel: tpu_custom_call.1
= control target key start
LH: loop header
LB: loop body
LE: loop exit
PB: predicated region body
PF: predicated region fallthrough
CT: control target
= control target key end

     0   :  { %9 = vsyncpa [#allocation3], 0  ;;  %s867_s0 = inlined_call_operand.hbm [shape: f32[2,4,256], index: 0, kind: input, shape index: {}]   ;;  %s868_s1 = inlined_call_operand.vmem [shape: f32[8,4], index: 1, kind: input, shape index: {}]   ;;  %s869_s2 = inlined_call_operand.hbm [shape: f32[256,128], index: 2, kind: input, shape index: {}]   ;;  %s870_s3 = inlined_call_operand.vmem [shape: f32[8,128], index: 3, kind: input, shape index: {}]   ;;  %s871_s4 = inlined_call_operand.hbm [shape: f32[2,8,128], index: 4, kind: output, shape index: {}]  }
   0x1   :  { %11 = vsyncpa [#allocation3 + $0x1], 0 }
   0x2   :  { %12 = vsyncpa [#allocation6], 0 }
   0x3   :  { %13 = vsyncpa [#allocation4], 0 }
   0x4   :  { %15 = vsyncpa [#allocation4 + $0x1], 0  ;;  %s721_s15 = smov 0   ;;  %s723_s16 = smov 0  }
   0x5   :  { %s725_s17 = smov 0   ;;  %s727_s18 = smov 0  }
   0x6 LB: > { %s155_s21 = sshll.u32 %s869_s2, 4  ;;  %s745_s22 = sadd.s32 4294967295, %s691_s18   ;;  %s691_s18 = sphi %s727_s18, %s881_s18   ;;  %s687_s17 = sphi %s725_s17, %s880_s17   ;;  %s683_s16 = sphi %s723_s16, %s879_s16   ;;  %s679_s15 = sphi %s721_s15, %s878_s15   ;;  %s156_s21 = int_to_ptr.hbm [resolvable:$true] %s155_s21 }
   0x7   : > { %p478_p0 = scmp.ge.s32.totalorder %s691_s18, 1  ;;  %p42_p1 = scmp.eq.s32.totalorder %s745_s22, 0 }
   0x8   : > { %p141_p2 = scmp.lt.s32.totalorder %s691_s18, 3  ;;  %s693_s24 = smov [#allocation5]  }
   0x9   : > { %s157_s25 = sshll.u32 %s693_s24, 4  ;;  %s694_s26 = smov 128   ;;  %s158_s25 = int_to_ptr.vmem [resolvable:$true] %s157_s25 }
   0xa   : > { %p750_p3 = pnand %p478_p0, %p141_p2  ;;  %s695_s27 = smov 8  }
   0xb   : > { %s477_s28 = sadd.s32 4294967294, %s691_s18   ;;  %s761_s29 = sadd.s32 1, %s691_s18  }
   0xc   : > { %p506_p4 = pneg %p750_p3  ;;  %s28_s30 = sadd.s32 1, %s687_s17 }
   0xd   : > { %s25_s5 = ssub.s32 %s691_s18, %s761_s29  ;;  %p35_p7 = scmp.ne.s32.totalorder %s687_s17, %s683_s16 }
   0xe   : > { %p507_p6 = pnand %p506_p4, %p42_p1  ;;  %p26_p8 = scmp.eq.s32.totalorder %s25_s5, 0 }
   0xf   : > { %p36_p9 = scmp.eq.s32.totalorder %s691_s18, 0  ;;  %p41_p10 = scmp.ne.s32.totalorder %s683_s16, %s679_s15 }
  0x10   : > { %509 = dma.hbm_to_vmem [thread:$0]  (!%p507_p6), %s156_s21, 4096, %s158_s25, [#allocation6], %s694_s26, %s694_s26, %s695_s27  }
  0x11   : > { %p128_p11 = scmp.eq.s32.totalorder %s745_s22, 1  ;;  %p777_p12 = por %p42_p1, %p41_p10 }
  0x12   : > { %s773_s6 = scalar_select %p26_p8, %s687_s17, %s28_s30  }
  0x13   : > { %p781_p13 = por %p128_p11, %p35_p7  ;;  %p134_p0 = scmp.eq.s32.totalorder %s477_s28, 1 }
  0x14   : > { %p37_p2 = por %p36_p9, %p35_p7  ;;  %s174_s9 = sand.u32 1, %s687_s17  }
  0x15   : > { %p786_p4 = por %p134_p0, %p41_p10  ;;  %p519_p6 = scmp.lt.s32.totalorder %s691_s18, 2 }
  0x16   : > { %s481_s11 = sshll.u32 %s174_s9, 3  ;;  %s497_s12 = sshll.u32 %s691_s18, 3 }
  0x17   : > { %s183_s19 = scalar_lea.hbm %s867_s0, %s497_s12  ;;  %s178_s21 = scalar_lea.vmem [#allocation2], %s481_s11 }
  0x18   : > { %s185_s20 = sshll.u32 %s183_s19, 4  ;;  %s187_s24 = sshll.u32 %s178_s21, 4  ;;  %s186_s20 = int_to_ptr.hbm [resolvable:$true] %s185_s20  ;;  %s188_s24 = int_to_ptr.vmem [resolvable:$true] %s187_s24 }
  0x19   : > { %p795_p8 = pnand %p519_p6, %p37_p2  ;;  %s175_s26 = scalar_lea.sflag [#allocation3], %s174_s9 }
  0x1a   : > { %s591_s27 = sshra.s32 %s186_s20, 4  ;;  %s598_s11 = scalar_lea.hbm %s867_s0, 16  ;;  %s592_s27 = int_to_ptr.hbm [resolvable:$true] %s591_s27 }
  0x1b   : > { %s593_s28 = scalar_lea.hbm %s592_s27, 8  ;;  %p595_p9 = pneg %p795_p8 }
  0x1c   : > { %p594_p7 = scmp.ne.s32.totalorder %s592_s27, %s593_s28  ;;  %p599_p0 = scmp.lt.s32.totalorder %s592_s27, %s867_s0 }
  0x1d   : > { %p600_p2 = scmp.lt.s32.totalorder %s598_s11, %s593_s28 }
  0x1e   : > { %p596_p10 = pnand %p595_p9, %p594_p7 }
  0x1f   : > { %p601_p6 = por %p600_p2, %p599_p0 }
  0x20   : > { %p597_p11 = pneg %p596_p10 }
  0x22   : > { %p602_p5 = pnand %p601_p6, %p597_p11 }
  0x24   : > { %605 = shalt.err (!%p602_p5)
}
  0x25   : > { %513 = dma.hbm_to_vmem [thread:$0]  (!%p795_p8), %s186_s20, 128, %s188_s24, %s175_s26  }
  0x26   : > { %196 = sbr.rel (%p750_p3) target bundleno = 349 (0x15d), region = 36  ;;  %s812_s9 = sand.u32 (!%p750_p3), 1, %s683_s16  }
  0x27   : > { %s485_s14 = sshll.u32 (!%p750_p3), %s812_s9, 3  ;;  %s199_s19 = scalar_lea.sflag (!%p750_p3), [#allocation3], %s812_s9 }
  0x28   : > { %s202_s21 = scalar_lea.vmem (!%p750_p3), [#allocation2], %s485_s14 }
  0x2b   : > { %666 = dma.done.wait (%p777_p12), %s199_s19, 128  }
  0x2c   : > { %668 = vsyncadd (%p777_p12), %s199_s19, 4294967168 }
  0x2d   : > { %670 = dma.done.wait (%p42_p1), [#allocation6], 4096  }
  0x2e   : > { %672 = vsyncadd (%p42_p1), [#allocation6], 4294963200  ;;  %v233_v0 = vld [vmem:[%s202_s21] sm:$0xff]  ;;  %v301_v4 = vld [vmem:[#allocation5 + $0x68] sm:$0xff]  ;;  %vm243_vm0 = vcmask 1043456   ;;  %vm239_vm1 = vcmask 31744  }
  0x2f   : > { %v303_v1 = vld [vmem:[#allocation5 + $0x78] sm:$0xff]  ;;  %236 = vst [vmem:[#allocation1] ss:$2 sm:$0xff] %v233_v0  ;;  %v302_v2 = vld [vmem:[#allocation5 + $0x70] sm:$0xff]  ;;  %v317_v6 = vld [vmem:[#allocation5 + $0xe8] sm:$0xff]  ;;  %s494_s25 = sshll.u32 %s745_s22, 3 }
  0x30   : > { %321 = vmatpush.msra.mxu2 %v303_v1  ;;  %v319_v3 = vld [vmem:[#allocation5 + $0xf8] sm:$0xff]  ;;  %v318_v5 = vld [vmem:[#allocation5 + $0xf0] sm:$0xff]  ;;  %v300_v7 = vld [vmem:[#allocation5 + $0x60] sm:$0xff]  ;;  %s392_s28 = scalar_lea.hbm %s871_s4, %s494_s25  ;;  %s232_s30 = scalar_lea.vmem [#allocation7], %s485_s14 }
  0x31   : > { %341 = vmatpush.msra.mxu3 %v319_v3  ;;  %v316_v8 = vld [vmem:[#allocation5 + $0xe0] sm:$0xff]  ;;  %v234_v9 = vld [vmem:[%s868_s1] sm:$0xff]  ;;  %v299_v10 = vld [vmem:[#allocation5 + $0x58] sm:$0xff]  ;;  %s394_s5 = sshll.u32 %s232_s30, 4  ;;  %s396_s11 = sshll.u32 %s392_s28, 4  ;;  %s395_s5 = int_to_ptr.vmem [resolvable:$true] %s394_s5  ;;  %s397_s11 = int_to_ptr.hbm [resolvable:$true] %s396_s11 }
  0x32   : > { %322 = vmatpush.msra.mxu2 %v302_v2  ;;  %v315_v11 = vld [vmem:[#allocation5 + $0xd8] sm:$0xff]  ;;  %v298_v14 = vld [vmem:[#allocation5 + $0x50] sm:$0xff]  ;;  %v297_v16 = vld [vmem:[#allocation5 + $0x48] sm:$0xff]  ;;  %s382_s22 = scalar_lea.sflag [#allocation4], %s812_s9  ;;  %s635_s12 = sshra.s32 %s397_s11, 4  ;;  %s636_s12 = int_to_ptr.hbm [resolvable:$true] %s635_s12 }
  0x33   : > { %342 = vmatpush.msra.mxu3 %v318_v5  ;;  %v314_v15 = vld [vmem:[#allocation5 + $0xd0] sm:$0xff]  ;;  %v313_v17 = vld [vmem:[#allocation5 + $0xc8] sm:$0xff]  ;;  %v296_v18 = vld [vmem:[#allocation5 + $0x40] sm:$0xff]  ;;  %s637_s13 = scalar_lea.hbm %s636_s12, 8  ;;  %s641_s21 = scalar_lea.hbm %s871_s4, 16 }
  0x34   : > { %323 = vmatpush.msra.mxu2 %v301_v4  ;;  %v312_v19 = vld [vmem:[#allocation5 + $0xc0] sm:$0xff]  ;;  %v295_v20 = vld [vmem:[#allocation5 + $0x38] sm:$0xff]  ;;  %v294_v22 = vld [vmem:[#allocation5 + $0x30] sm:$0xff]  ;;  %p638_p1 = scmp.ne.s32.totalorder %s636_s12, %s637_s13  ;;  %p642_p12 = scmp.lt.s32.totalorder %s636_s12, %s871_s4 }
  0x35   : > { %343 = vmatpush.msra.mxu3 %v317_v6  ;;  %v311_v21 = vld [vmem:[#allocation5 + $0xb8] sm:$0xff]  ;;  %v310_v23 = vld [vmem:[#allocation5 + $0xb0] sm:$0xff]  ;;  %v293_v24 = vld [vmem:[#allocation5 + $0x28] sm:$0xff]  ;;  %p643_p8 = scmp.lt.s32.totalorder %s641_s21, %s637_s13 }
  0x36   : > { %324 = vmatpush.msra.mxu2 %v300_v7  ;;  %v237_v12 = vld.sshfl [vmem:[#allocation1] sm:$0xff pattern:$0x75316420]  ;;  %v238_v13 = vld.sshfl [vmem:[#allocation1 + $0x8] sm:$0xff pattern:$0x75316420]  ;;  %p639_p3 = pnand %p638_p1, %p781_p13 }
  0x37   : > { %344 = vmatpush.msra.mxu3 %v316_v8  ;;  %488 = vmatpush.msk.msra.mxu0 %vm243_vm0, %v237_v12  ;;  %v309_v25 = vld [vmem:[#allocation5 + $0xa8] sm:$0xff]  ;;  %v292_v26 = vld [vmem:[#allocation5 + $0x20] sm:$0xff]  ;;  %v291_v28 = vld [vmem:[#allocation5 + $0x18] sm:$0xff]  ;;  %p644_p7 = por %p643_p8, %p642_p12 }
  0x38   : > { %490 = vmatpush.msk.msra.mxu1 %vm243_vm0, %v238_v13  ;;  %489 = vmatmul.msk.f32.vlgmr.msra.gmra.mxu0 %vm239_vm1, %v234_v9  ;;  %v308_v27 = vld [vmem:[#allocation5 + $0xa0] sm:$0xff]  ;;  %v307_v29 = vld [vmem:[#allocation5 + $0x98] sm:$0xff]  ;;  %v290_v30 = vld [vmem:[#allocation5 + $0x10] sm:$0xff]  ;;  %p640_p5 = pneg %p639_p3 }
  0x39   : > { %491 = vmatmul.msk.f32.vlgmr.msra.gmra.mxu1 %vm239_vm1, %v234_v9  ;;  %325 = vmatpush.msra.mxu2 %v299_v10  ;;  %v306_v31 = vld [vmem:[#allocation5 + $0x90] sm:$0xff]  ;;  %v289_v32 = vld [vmem:[#allocation5 + $0x8] sm:$0xff]  ;;  %v288_v33 = vld [vmem:[#allocation5] sm:$0xff] }
  0x3a   : > { %345 = vmatpush.msra.mxu3 %v315_v11  ;;  %v305_v34 = vld [vmem:[#allocation5 + $0x88] sm:$0xff]  ;;  %v304_v35 = vld [vmem:[#allocation5 + $0x80] sm:$0xff]  ;;  %p645_p9 = pnand %p644_p7, %p640_p5 }
  0x3b   : > { %326 = vmatpush.msra.mxu2 %v298_v14  ;;  %v320_v38 = vld [vmem:[%s870_s3] sm:$0xff] }
  0x3c   : > { %346 = vmatpush.msra.mxu3 %v314_v15 }
  0x3d   : > { %327 = vmatpush.msra.mxu2 %v297_v16 }
  0x3e   : > { %347 = vmatpush.msra.mxu3 %v313_v17 }
  0x3f   : > { %328 = vmatpush.msra.mxu2 %v296_v18 }
  0x40   : > { %348 = vmatpush.msra.mxu3 %v312_v19 }
  0x41   : > { %329 = vmatpush.msra.mxu2 %v295_v20 }
  0x42   : > { %349 = vmatpush.msra.mxu3 %v311_v21 }
  0x43   : > { %330 = vmatpush.msra.mxu2 %v294_v22 }
  0x44   : > { %350 = vmatpush.msra.mxu3 %v310_v23 }
  0x45   : > { %331 = vmatpush.msra.mxu2 %v293_v24 }
  0x46   : > { %351 = vmatpush.msra.mxu3 %v309_v25 }
  0x47   : > { %332 = vmatpush.msra.mxu2 %v292_v26 }
  0x48   : > { %352 = vmatpush.msra.mxu3 %v308_v27 }
  0x49   : > { %333 = vmatpush.msra.mxu2 %v291_v28 }
  0x4a   : > { %353 = vmatpush.msra.mxu3 %v307_v29 }
  0x4b   : > { %334 = vmatpush.msra.mxu2 %v290_v30 }
  0x4c   : > { %354 = vmatpush.msra.mxu3 %v306_v31 }
  0x4d   : > { %335 = vmatpush.msra.mxu2 %v289_v32 }
  0x4e   : > { %355 = vmatpush.msra.mxu3 %v305_v34 }
  0x4f   : > { %336 = vmatpush.msra.mxu2 %v288_v33 }
  0x50   : > { %356 = vmatpush.msra.mxu3 %v304_v35 }
  0xb5   : > { %v265_v36 = vpop.f32.mrf.mxu0 }
  0xb6   : > { %v285_v37 = vpop.f32.mrf.mxu1  ;;  %337 = vmatmul.f32.vlgmr.msra.gmra.mxu2 %v265_v36 }
  0xb7   : > { %357 = vmatmul.f32.vlgmr.msra.gmra.mxu3 %v285_v37 }
 0x139   : > { %v338_v39 = vpop.f32.mrf.mxu2 }
 0x13a   : > { %v358_v40 = vpop.f32.mrf.mxu3  ;;  %v339_v41 = vadd.f32 %v338_v39, %v320_v38 }
 0x13c   : > { %v359_v42 = vadd.f32 %v358_v40, %v339_v41 }
 0x13e   : > { %v492_v43 = vmul.f32 -1.442695, %v359_v42 }
 0x140   : > { %557 = vpow2.f32 %v492_v43 }
 0x146   : > { %v558_v44 = vpop.eup %557 }
 0x147   : > { %v364_v45 = vadd.f32 1.0, %v558_v44 }
 0x149   : > { %559 = vrcp.f32 %v364_v45  ;;  %v376_v49 = vand.u32 2147483648, %v364_v45  ;;  %v374_v51 = vand.u32 2147483647, %v364_v45  ;;  %vm370_vm3 = vweird.f32 %v364_v45 }
 0x14b   : > { %v377_v53 = vor.u32 1.1754944e-38, %v376_v49  ;;  %vm375_vm5 = vcmp.eq.f32.partialorder %v374_v51, 8.507059e+37 }
 0x14f   : > { %v560_v46 = vpop.eup %559 }
 0x150   : > { %v366_v47 = vmul.f32 %v560_v46, %v364_v45  ;;  %vm371_vm2 = vweird.f32 %v560_v46 }
 0x151   : > { %vm372_vm4 = vmor %vm370_vm3, %vm371_vm2 }
 0x152   : > { %v367_v48 = vsub.f32 1.0, %v366_v47 }
 0x154   : > { %v368_v50 = vmul.f32 %v560_v46, %v367_v48 }
 0x156   : > { %v369_v52 = vadd.f32 %v560_v46, %v368_v50 }
 0x158   : > { %v373_v54 = vsel %vm372_vm4, %v560_v46, %v369_v52 }
 0x159   : > { %v378_v55 = vsel %vm375_vm5, %v377_v53, %v373_v54 }
 0x15a   : > { %380 = vst [vmem:[%s232_s30] sm:$0xff] %v378_v55 }
 0x15b   : > { %648 = shalt.err (!%p645_p9)
}
 0x15c   : > { %504 = dma.vmem_to_hbm [thread:$0]  (%p781_p13), %s395_s5, 128, %s397_s11, %s382_s22  }
 0x15d PF: > { %s408_s9 = sand.u32 1, %s679_s15   ;;  %p877_p10 = scmp.ge.s32.totalorder %s691_s18, 2 }
 0x15e   : > { %s409_s20 = scalar_lea.sflag [#allocation4], %s408_s9 }
 0x15f   : > { %p515_p11 = pnand %p877_p10, %p786_p4 }
 0x161   : > { %p516_p0 = pneg %p515_p11 }
 0x163   : > { %674 = dma.done.wait (%p516_p0), %s409_s20, 128  }
 0x164   : > { %676 = vsyncadd (%p516_p0), %s409_s20, 4294967168  ;;  %p18_p2 = scmp.ge.s32.totalorder %s761_s29, 4   ;;  %s878_s15 = smov %s683_s16 }
 0x165   : > { %s879_s16 = smov %s687_s17  ;;  %s880_s17 = smov %s773_s6 }
 0x166   : > { %s881_s18 = smov %s761_s29  ;;  %20 = sbr.rel (!%p18_p2) target bundleno = 6 (0x6), region = 85 }
 0x16b   :  { %415 = vsyncpa [#allocation3], 1 }
 0x16c   :  { %417 = vsyncpa [#allocation3 + $0x1], 1 }
 0x16d   :  { %418 = vsyncpa [#allocation6], 1 }
 0x16e   :  { %419 = vsyncpa [#allocation4], 1 }
 0x16f   :  { %421 = vsyncpa [#allocation4 + $0x1], 1 }

</bundles_post_ra>
